<compile_context>
chip_gen: v7x
topology: tpu7x:2x2x1
jax: 0.10.0
libtpu: 0.0.40
codegen_flags: <defaults>
</compile_context>

<pallas_src>
import functools
import math

import jax
import jax.numpy as jnp
from jax import lax
from jax.experimental import pallas as pl
from jax.experimental.pallas import tpu as pltpu

EPS = 1e-07
_LANES = 128
_SUBLANES = 8
_DEFAULT_TILE_ROWS = 8192           # (8192, 128) f32 block = 4 MiB per buffer
_NUM_CORE_SPLITS = 2                # leading "parallel" axis (v7x megacore)


def _round_up(a: int, b: int) -> int:
    return ((a + b - 1) // b) * b


def _nce_kernel(x_ref, part_ref, acc_ref, *,
                kq_eps, kp1, fold_pos, tiles_per_split, num_tiles,
                tile_rows, n_total, needs_tail_mask, has_dup):
    c = pl.program_id(0)                 # core-split index ("parallel")
    i = pl.program_id(1)                 # tile index within split ("arbitrary")
    tile_id = c * tiles_per_split + i    # global tile id (may overhang by 1 on
                                         # the clamped duplicate step)

    @pl.when(i == 0)
    def _init():
        acc_ref[...] = jnp.zeros_like(acc_ref)

    xv = x_ref[...].astype(jnp.float32)                  # (tile_rows, 128)
    neg_lg = jnp.log(xv + jnp.float32(kq_eps))           # 1st EUP log
    if fold_pos:
        # Column-0 ("positive") elements land at lanes where lane % (k+1) == 0
        # because (k+1) divides 128 (hence power of two -> bitwise AND).
        lane = lax.broadcasted_iota(jnp.int32, xv.shape, 1)
        is_pos = (lane & (kp1 - 1)) == 0
        contrib = jnp.where(is_pos, jnp.log(xv), 0.0) - neg_lg   # 2nd EUP log
    else:
        contrib = -neg_lg

    def _accumulate(vals):
        # Elementwise (VPU) fold into an (8,128) accumulator; the expensive
        # cross-lane (XLU) reduce happens once, in the wrapper.
        acc_ref[...] += vals.reshape(-1, _SUBLANES, _LANES).sum(axis=0)

    if needs_tail_mask:
        # Only the very last tile touches padding / partial-block garbage.
        @pl.when(tile_id < num_tiles - 1)
        def _full_tiles():
            _accumulate(contrib)

        @pl.when(tile_id == num_tiles - 1)
        def _tail_tile():
            tail_row0 = (num_tiles - 1) * tile_rows       # compile-time const
            full_rows = n_total // _LANES
            rem_lanes = n_total % _LANES
            r = lax.broadcasted_iota(jnp.int32, xv.shape, 0) + tail_row0
            l = lax.broadcasted_iota(jnp.int32, xv.shape, 1)
            valid = (r < full_rows) | ((r == full_rows) & (l < rem_lanes))
            _accumulate(jnp.where(valid, contrib, 0.0))
    else:
        if has_dup:
            @pl.when(tile_id < num_tiles)
            def _real_tiles():
                _accumulate(contrib)
        else:
            _accumulate(contrib)

    @pl.when(i == tiles_per_split - 1)
    def _finalize():
        part_ref[...] = acc_ref[...]


def nce_criterion(x: jax.Array, len_neg: int, *,
                  tile_rows: int = _DEFAULT_TILE_ROWS) -> jax.Array:
    """NCE loss. x: (batch, k+1) with positive entries. Returns shape (1,).

    bf16 / fp16 inputs are streamed natively (half the HBM traffic) and
    upcast to f32 inside the kernel right before the logs.
    """
    batch_size, kp1 = x.shape
    k = kp1 - 1
    q_noise = 1.0 / float(len_neg)
    kq = float(k) * q_noise
    kq_eps = kq + EPS
    const_term = float(batch_size) * float(k) * math.log(kq) if k > 0 else 0.0

    # Positive-column fold is valid when (k+1) divides 128.
    fold_pos = (128 % kp1) == 0

    # ---- lane-dense view: (rows, 128); pad at most 127 elements ------------
    n_total = batch_size * kp1
    rows = pl.cdiv(n_total, _LANES)
    x_flat = x.reshape(-1)
    if rows * _LANES != n_total:
        # Small pad to complete the last lane row (only when batch*(k+1) is
        # not already a multiple of 128); pad values are masked in-kernel.
        x_flat = jnp.pad(x_flat, (0, rows * _LANES - n_total),
                         constant_values=1.0)
    x2d = x_flat.reshape(rows, _LANES)

    # ---- tiling / grid ------------------------------------------------------
    tile_rows = max(32, (int(tile_rows) // 32) * 32)    # 32: bf16/int8 packing
    tile_rows = min(tile_rows, _round_up(rows, 32))
    num_tiles = pl.cdiv(rows, tile_rows)
    needs_tail_mask = num_tiles * tile_rows * _LANES != n_total

    ncs = _NUM_CORE_SPLITS if num_tiles >= 2 else 1
    tiles_per_split = pl.cdiv(num_tiles, ncs)
    has_dup = ncs * tiles_per_split != num_tiles

    def x_map(c, i):
        t = c * tiles_per_split + i
        # Clamp the (at most one) overhanging step of the second split to a
        # valid block; the kernel skips its accumulation.
        return (jnp.minimum(t, num_tiles - 1), 0)

    kernel = functools.partial(
        _nce_kernel, kq_eps=kq_eps, kp1=kp1, fold_pos=fold_pos,
        tiles_per_split=tiles_per_split, num_tiles=num_tiles,
        tile_rows=tile_rows, n_total=n_total,
        needs_tail_mask=needs_tail_mask, has_dup=has_dup)

    covered = num_tiles * tile_rows * _LANES
    cost = pl.CostEstimate(
        flops=8 * covered,
        transcendentals=(2 if fold_pos else 1) * covered,
        bytes_accessed=(x2d.size * x2d.dtype.itemsize
                        + ncs * _SUBLANES * _LANES * 4))

    parts = pl.pallas_call(
        kernel,
        out_shape=jax.ShapeDtypeStruct((ncs, _SUBLANES, _LANES), jnp.float32),
        grid_spec=pltpu.PrefetchScalarGridSpec(
            num_scalar_prefetch=0,
            grid=(ncs, tiles_per_split),
            in_specs=[pl.BlockSpec((tile_rows, _LANES), x_map)],
            out_specs=pl.BlockSpec((None, _SUBLANES, _LANES),
                                   lambda c, i: (c, 0, 0)),
            scratch_shapes=[pltpu.VMEM((_SUBLANES, _LANES), jnp.float32)],
        ),
        compiler_params=pltpu.CompilerParams(
            dimension_semantics=("parallel", "arbitrary"),
            vmem_limit_bytes=32 * 1024 * 1024,
        ),
        cost_estimate=cost,
    )(x2d)

    total = jnp.sum(parts) + jnp.float32(const_term)
    if not fold_pos:
        # Rare fallback ((k+1) does not divide 128): positive-column term is
        # tiny (B logs) and is added here in plain JAX.
        # TODO(synk): this column slice re-reads x with a strided gather; a
        # fully general in-kernel fold needs a per-element mod-(k+1) mask.
        total = total + jnp.sum(jnp.log(x[:, 0].astype(jnp.float32)))
    loss = -(total / jnp.float32(batch_size))
    # PyTorch: log_D0.view(-1,1).sum(0) keeps a size-1 dim -> loss shape (1,)
    return loss.reshape((1,))


def nce_criterion_ref(x, len_neg):
    """Pure-JAX reference mirroring the PyTorch module exactly."""
    batch_size, kp1 = x.shape
    k = kp1 - 1
    q_noise = 1.0 / float(len_neg)
    xf = x.astype(jnp.float32)
    p_p = xf[:, 0]
    log_d1 = jnp.log(p_p / (p_p + k * q_noise + EPS))
    p_n = xf[:, 1:]
    log_d0 = jnp.log((k * q_noise) / (p_n + k * q_noise + EPS))
    loss = -(jnp.sum(log_d1) + jnp.sum(log_d0.reshape(-1, 1), axis=0)) / batch_size
    return loss  # shape (1,)


if __name__ == "__main__":
    key = jax.random.PRNGKey(0)
    len_neg = 4096
    k1, k2, k3 = jax.random.split(key, 3)

    # Case 1: toy module size (batch=8, k=15 -> 16 cols). 8*16 = 128 elements
    # = exactly one lane row: no padding, single tile, folded pos column.
    x1 = jax.random.uniform(k1, (8, 16), jnp.float32, minval=0.01, maxval=1.0)
    out1 = jax.block_until_ready(nce_criterion(x1, len_neg))
    ref1 = nce_criterion_ref(x1, len_neg)
    assert out1.shape == (1,)
    assert jnp.allclose(out1, ref1, rtol=1e-4, atol=1e-4), (out1, ref1)

    # Case 2: multi-tile + two-way "parallel" split + clamped duplicate step +
    # ragged tail mask (521*16 = 8336 elems -> 66 lane rows, tile_rows=32).
    x2 = jax.random.uniform(k2, (521, 16), jnp.float32, minval=0.01, maxval=1.0)
    out2 = jax.block_until_ready(nce_criterion(x2, len_neg, tile_rows=32))
    ref2 = nce_criterion_ref(x2, len_neg)
    assert out2.shape == (1,)
    assert jnp.allclose(out2, ref2, rtol=1e-4, atol=1e-4), (out2, ref2)

    # Case 3: (k+1) does not divide 128 -> wrapper fallback for the positive
    # column; bf16 input exercises the native-dtype ingestion path.
    x3 = jax.random.uniform(k3, (50, 11), jnp.float32,
                            minval=0.01, maxval=1.0).astype(jnp.bfloat16)
    out3 = jax.block_until_ready(nce_criterion(x3, len_neg))
    ref3 = nce_criterion_ref(x3, len_neg)
    assert out3.shape == (1,)
    assert jnp.allclose(out3, ref3, rtol=1e-3, atol=1e-3), (out3, ref3)

    print("KERNEL_OK")
</pallas_src>

<mosaic_0001>
module attributes {stable_mosaic.version = 11 : i64} {
  func.func @_nce_kernel(%arg0: i32, %arg1: i32, %arg2: memref<32x128xf32, #tpu.memory_space<vmem>>, %arg3: memref<1x8x128xf32, #tpu.memory_space<vmem>>, %arg4: memref<8x128xf32, #tpu.memory_space<vmem>>) attributes {dimension_semantics = [#tpu.dimension_semantics<parallel>, #tpu.dimension_semantics<arbitrary>], iteration_bounds = array<i64: 1, 1>, scalar_prefetch = 0 : i64, scratch_operands = 1 : i64, tpu.core_type = #tpu.core_type<tc>, window_params = [{transform_indices = @transform_0, window_bounds = array<i64: 32, 128>}, {transform_indices = @transform_1, window_bounds = array<i64: 1, 8, 128>}]} {
    %c1_i32 = arith.constant 1 : i32
    %0 = arith.muli %arg0, %c1_i32 : i32
    %1 = arith.addi %0, %arg1 : i32
    %c0_i32 = arith.constant 0 : i32
    %2 = arith.cmpi eq, %arg1, %c0_i32 : i32
    %3 = arith.extui %2 : i1 to i32
    %c0_i32_0 = arith.constant 0 : i32
    %4 = arith.cmpi ne, %3, %c0_i32_0 : i32
    scf.if %4 {
      %cst_10 = arith.constant 0.000000e+00 : f32
      %27 = vector.broadcast %cst_10 : f32 to vector<8x128xf32>
      %c0_11 = arith.constant 0 : index
      %c0_12 = arith.constant 0 : index
      %28 = vector.load %arg4[%c0_11, %c0_12] : memref<8x128xf32, #tpu.memory_space<vmem>>, vector<8x128xf32>
      tpu.vector_store %arg4[%c0_11, %c0_12], %27 {strides = array<i32>} : memref<8x128xf32, #tpu.memory_space<vmem>>, vector<8x128xf32>,
    } else {
    }
    %c0 = arith.constant 0 : index
    %c0_1 = arith.constant 0 : index
    %5 = vector.load %arg2[%c0, %c0_1] : memref<32x128xf32, #tpu.memory_space<vmem>>, vector<32x128xf32>
    %cst = arith.constant 0.00366220926 : f32
    %6 = vector.broadcast %cst : f32 to vector<32x128xf32>
    %7 = arith.addf %5, %6 : vector<32x128xf32>
    %8 = math.log %7 : vector<32x128xf32>
    %9 = tpu.iota {dimensions = array<i32: 1>} : vector<32x128xi32>
    %c15_i32 = arith.constant 15 : i32
    %10 = vector.broadcast %c15_i32 : i32 to vector<32x128xi32>
    %11 = arith.andi %9, %10 : vector<32x128xi32>
    %c0_i32_2 = arith.constant 0 : i32
    %12 = vector.broadcast %c0_i32_2 : i32 to vector<32x128xi32>
    %13 = arith.cmpi eq, %11, %12 : vector<32x128xi32>
    %14 = math.log %5 : vector<32x128xf32>
    %cst_3 = arith.constant 0.000000e+00 : f32
    %15 = vector.broadcast %cst_3 : f32 to vector<32x128xf32>
    %16 = arith.select %13, %14, %15 : vector<32x128xi1>, vector<32x128xf32>
    %17 = arith.subf %16, %8 : vector<32x128xf32>
    %c0_i32_4 = arith.constant 0 : i32
    %18 = arith.cmpi slt, %1, %c0_i32_4 : i32
    %19 = arith.extui %18 : i1 to i32
    %c0_i32_5 = arith.constant 0 : i32
    %20 = arith.cmpi ne, %19, %c0_i32_5 : i32
    scf.if %20 {
      %c0_10 = arith.constant 0 : index
      %c0_11 = arith.constant 0 : index
      %27 = vector.load %arg4[%c0_10, %c0_11] : memref<8x128xf32, #tpu.memory_space<vmem>>, vector<8x128xf32>
      %28 = vector.shape_cast %17 : vector<32x128xf32> to vector<4x8x128xf32>
      %cst_12 = arith.constant dense<0.000000e+00> : vector<8x128xf32>
      %29 = vector.multi_reduction <add>, %28, %cst_12 [0] : vector<4x8x128xf32> to vector<8x128xf32>
      %30 = arith.addf %27, %29 : vector<8x128xf32>
      %c0_13 = arith.constant 0 : index
      %c0_14 = arith.constant 0 : index
      %31 = vector.load %arg4[%c0_13, %c0_14] : memref<8x128xf32, #tpu.memory_space<vmem>>, vector<8x128xf32>
      tpu.vector_store %arg4[%c0_13, %c0_14], %30 {strides = array<i32>} : memref<8x128xf32, #tpu.memory_space<vmem>>, vector<8x128xf32>,
    } else {
    }
    %c0_i32_6 = arith.constant 0 : i32
    %21 = arith.cmpi eq, %1, %c0_i32_6 : i32
    %22 = arith.extui %21 : i1 to i32
    %c0_i32_7 = arith.constant 0 : i32
    %23 = arith.cmpi ne, %22, %c0_i32_7 : i32
    scf.if %23 {
      %27 = tpu.iota {dimensions = array<i32: 0>} : vector<32x128xi32>
      %c0_i32_10 = arith.constant 0 : i32
      %28 = vector.broadcast %c0_i32_10 : i32 to vector<32x128xi32>
      %29 = arith.addi %27, %28 : vector<32x128xi32>
      %30 = tpu.iota {dimensions = array<i32: 1>} : vector<32x128xi32>
      %c1_i32_11 = arith.constant 1 : i32
      %31 = vector.broadcast %c1_i32_11 : i32 to vector<32x128xi32>
      %32 = arith.cmpi slt, %29, %31 : vector<32x128xi32>
      %c1_i32_12 = arith.constant 1 : i32
      %33 = vector.broadcast %c1_i32_12 : i32 to vector<32x128xi32>
      %34 = arith.cmpi eq, %29, %33 : vector<32x128xi32>
      %c0_i32_13 = arith.constant 0 : i32
      %35 = vector.broadcast %c0_i32_13 : i32 to vector<32x128xi32>
      %36 = arith.cmpi slt, %30, %35 : vector<32x128xi32>
      %37 = arith.andi %34, %36 : vector<32x128xi1>
      %38 = arith.ori %32, %37 : vector<32x128xi1>
      %cst_14 = arith.constant 0.000000e+00 : f32
      %39 = vector.broadcast %cst_14 : f32 to vector<32x128xf32>
      %40 = arith.select %38, %17, %39 : vector<32x128xi1>, vector<32x128xf32>
      %c0_15 = arith.constant 0 : index
      %c0_16 = arith.constant 0 : index
      %41 = vector.load %arg4[%c0_15, %c0_16] : memref<8x128xf32, #tpu.memory_space<vmem>>, vector<8x128xf32>
      %42 = vector.shape_cast %40 : vector<32x128xf32> to vector<4x8x128xf32>
      %cst_17 = arith.constant dense<0.000000e+00> : vector<8x128xf32>
      %43 = vector.multi_reduction <add>, %42, %cst_17 [0] : vector<4x8x128xf32> to vector<8x128xf32>
      %44 = arith.addf %41, %43 : vector<8x128xf32>
      %c0_18 = arith.constant 0 : index
      %c0_19 = arith.constant 0 : index
      %45 = vector.load %arg4[%c0_18, %c0_19] : memref<8x128xf32, #tpu.memory_space<vmem>>, vector<8x128xf32>
      tpu.vector_store %arg4[%c0_18, %c0_19], %44 {strides = array<i32>} : memref<8x128xf32, #tpu.memory_space<vmem>>, vector<8x128xf32>,
    } else {
    }
    %c0_i32_8 = arith.constant 0 : i32
    %24 = arith.cmpi eq, %arg1, %c0_i32_8 : i32
    %25 = arith.extui %24 : i1 to i32
    %c0_i32_9 = arith.constant 0 : i32
    %26 = arith.cmpi ne, %25, %c0_i32_9 : i32
    scf.if %26 {
      %c0_10 = arith.constant 0 : index
      %c0_11 = arith.constant 0 : index
      %27 = vector.load %arg4[%c0_10, %c0_11] : memref<8x128xf32, #tpu.memory_space<vmem>>, vector<8x128xf32>
      %c0_12 = arith.constant 0 : index
      %c0_13 = arith.constant 0 : index
      %c0_14 = arith.constant 0 : index
      %28 = vector.load %arg3[%c0_12, %c0_13, %c0_14] : memref<1x8x128xf32, #tpu.memory_space<vmem>>, vector<1x8x128xf32>
      %29 = vector.shape_cast %28 : vector<1x8x128xf32> to vector<8x128xf32>
      %30 = vector.shape_cast %27 : vector<8x128xf32> to vector<1x8x128xf32>
      tpu.vector_store %arg3[%c0_12, %c0_13, %c0_14], %30 {strides = array<i32>} : memref<1x8x128xf32, #tpu.memory_space<vmem>>, vector<1x8x128xf32>,
    } else {
    }
    return
  }
  func.func @transform_0(%arg0: i32, %arg1: i32) -> (i32, i32) {
    %c1_i32 = arith.constant 1 : i32
    %0 = arith.muli %arg0, %c1_i32 : i32
    %1 = arith.addi %0, %arg1 : i32
    %c0_i32 = arith.constant 0 : i32
    %2 = arith.minsi %1, %c0_i32 : i32
    %c0_i32_0 = arith.constant 0 : i32
    %c0_i32_1 = arith.constant 0 : i32
    return %2, %c0_i32_0 : i32, i32
  }
  func.func @transform_1(%arg0: i32, %arg1: i32) -> (i32, i32, i32) {
    %c0_i32 = arith.constant 0 : i32
    %c0_i32_0 = arith.constant 0 : i32
    %c0_i32_1 = arith.constant 0 : i32
    return %arg0, %c0_i32, %c0_i32_0 : i32, i32, i32
  }
}

</mosaic_0001>

<bundles_post_ra>
// kernel: tpu_custom_call.1
= control target key start
LH: loop header
LB: loop body
LE: loop exit
PB: predicated region body
PF: predicated region fallthrough
CT: control target
= control target key end

     0   :  { %6 = vsyncpa [#allocation4], 0  ;;  %s242_s0 = inlined_call_operand.hbm [shape: f32[1,128], index: 0, kind: input, shape index: {}]   ;;  %s243_s1 = inlined_call_operand.hbm [shape: f32[1,8,128], index: 1, kind: output, shape index: {}]  }
   0x1   :  { %7 = vsyncpa [#allocation5], 0 }
   0x2   :  { %18 = vsyncadd [#allocation4], 496  ;;  %s204_s6 = smov [#allocation3]   ;;  %s156_s10 = scalar_lea.hbm %s242_s0, 16 }
   0x3   :  { %s22_s7 = sshll.u32 %s204_s6, 4  ;;  %p157_p0 = scmp.ne.s32.totalorder %s242_s0, %s156_s10  ;;  %s23_s7 = int_to_ptr.vmem [resolvable:$true] %s22_s7 }
   0x4   :  { %p160_p1 = scmp.lt.u32.totalorder %s156_s10, %s242_s0 }
   0x6   :  { %p162_p2 = pnand %p160_p1, %p157_p0 }
   0x8   :  { %165 = shalt.err (!%p162_p2)
}
   0x9   :  { %s166_s15 = scalar_lea.vmem %s23_s7, 16  ;;  %s170_s16 = scalar_lea.vmem %s23_s7, 512 }
   0xa   :  { %p167_p3 = scmp.ne.s32.totalorder %s23_s7, %s166_s15  ;;  %p171_p4 = scmp.lt.s32.totalorder %s23_s7, %s23_s7 }
   0xb   :  { %p172_p5 = scmp.lt.s32.totalorder %s170_s16, %s166_s15 }
   0xd   :  { %p173_p6 = por %p172_p5, %p171_p4 }
   0xf   :  { %p174_p7 = pnand %p173_p6, %p167_p3 }
  0x11   :  { %177 = shalt.err (!%p174_p7)
}
  0x12   :  { %s205_s17 = smov 16   ;;  %s206_s18 = smov 1  }
  0x13   :  { %28 = dma.hbm_to_vmem [thread:$0]  %s242_s0, 16, %s23_s7, [#allocation4], %s205_s17, %s205_s17, %s206_s18  }
  0x14   :  { %200 = dma.done.wait [#allocation4], 512  }
  0x15   :  { %201 = vsyncadd [#allocation4], 4294966784  ;;  %v60_v0 = vlaneseq  ;;  %v44_v1 = vld [vmem:[#allocation3] sm:$0xff]  ;;  %s207_s21 = smov [#allocation6]  }
  0x16   :  { %v48_v2 = vadd.f32 0.0036622093, %v44_v1  ;;  %152 = vlog2.f32 %v44_v1  ;;  %s137_s22 = sshll.u32 %s207_s21, 4  ;;  %s138_s22 = int_to_ptr.vmem [resolvable:$true] %s137_s22 }
  0x17   :  { %v61_v3 = vand.u32 127, %v60_v0  ;;  %v95_v6 = vshrl.u32 %v60_v0, 7  ;;  %s178_s0 = scalar_lea.vmem %s138_s22, 128  ;;  %p183_p9 = scmp.lt.s32.totalorder %s138_s22, %s138_s22 }
  0x18   :  { %154 = vlog2.f32 %v48_v2  ;;  %p179_p8 = scmp.ne.s32.totalorder %s138_s22, %s178_s0  ;;  %p184_p10 = scmp.lt.s32.totalorder %s178_s0, %s178_s0 }
  0x19   :  { %v62_v4 = vand.u32 15, %v61_v3  ;;  %vm99_vm1 = vcmp.lt.s32.totalorder %v95_v6, 1 }
  0x1a   :  { %p185_p11 = por %p184_p10, %p183_p9 }
  0x1b   :  { %vm63_vm0 = vcmp.eq.s32.totalorder %v62_v4, 0 }
  0x1c   :  { %p186_p12 = pnand %p185_p11, %p179_p8 }
  0x20   :  { %v153_v5 = vpop.eup %152 }
  0x21   :  { %v65_v7 = vmul.f32 0.6931472, %v153_v5 }
  0x22   :  { %v155_v8 = vpop.eup %154 }
  0x23   :  { %v53_v9 = vmul.f32 0.6931472, %v155_v8  ;;  %v72_v10 = vsel %vm63_vm0, %v65_v7, 0.0 }
  0x25   :  { %v76_v11 = vsub.f32 %v72_v10, %v53_v9 }
  0x27   :  { %v116_v12 = vsel %vm99_vm1, %v76_v11, 0.0 }
  0x28   :  { %130 = vst [vmem:[#allocation6] sm:$0xff] %v116_v12 }
  0x29   :  { %189 = shalt.err (!%p186_p12)
}
  0x2a   :  { %s190_s25 = scalar_lea.hbm %s243_s1, 128 }
  0x2b   :  { %p191_p13 = scmp.ne.s32.totalorder %s243_s1, %s190_s25  ;;  %p194_p0 = scmp.lt.u32.totalorder %s190_s25, %s243_s1 }
  0x2d   :  { %p196_p1 = pnand %p194_p0, %p191_p13 }
  0x2f   :  { %199 = shalt.err (!%p196_p1)
}
  0x30   :  { %140 = dma.vmem_to_hbm [thread:$0]  %s138_s22, 128, %s243_s1, [#allocation5]  }
  0x31   :  { %202 = dma.done.wait [#allocation5], 128  }
  0x32   :  { %203 = vsyncadd [#allocation5], 4294967168 }
  0x33   :  { %144 = vsyncpa [#allocation4], 1 }
  0x34   :  { %145 = vsyncpa [#allocation5], 1 }

</bundles_post_ra>
